<compile_context>
chip_gen: v5e
topology: v5e:2x2
jax: 0.10.0
libtpu: 0.0.40
codegen_flags: <defaults>
</compile_context>

<pallas_src>
import jax
import jax.numpy as jnp
from jax.experimental import pallas as pl
from jax.experimental.pallas import tpu as pltpu


def _mlp_kernel(x_ref, w1_ref, b1_ref, w2_ref, b2_ref, o_ref):
    # In-kernel cast (no-op when compute dtype is f32).  OOB rows of a partial
    # last tile contain garbage; their outputs are clipped on store.
    x = x_ref[...].astype(w1_ref.dtype)

    # fc1: (TB, K) @ (K, H) on the MXU with f32 accumulation.
    h = jnp.dot(x, w1_ref[...], preferred_element_type=jnp.float32)
    # bias + ReLU in f32 on the VPU.
    h = jnp.maximum(h + b1_ref[...], 0.0)

    # fc2: VPU multiply + lane reduction over H (keeps the MXU free for fc1).
    out = jnp.sum(h * w2_ref[...], axis=-1, keepdims=True) + b2_ref[0, 0]
    o_ref[...] = out.astype(o_ref.dtype)


def _round_up(x, m):
    return ((x + m - 1) // m) * m


def fitness_predictor_forward(x, w1, b1, w2, b2, *, block_b=None,
                              compute_dtype=jnp.bfloat16):
    """Forward pass equivalent to FitnessPredictor.forward.

    x : (B, input_size) float32
    w1: (hidden, input_size) float32   (PyTorch nn.Linear weight layout)
    b1: (hidden,) float32
    w2: (1, hidden) float32
    b2: (1,) float32
    returns (B, 1) float32

    Note: with the default compute_dtype=bf16 only x and W1 are cast; the
    post-ReLU activations and fc2 stay in f32.  Pass compute_dtype=jnp.float32
    for ~1e-5 accuracy.
    """
    B, in_size = x.shape
    hidden = w1.shape[0]

    # ---- batch-tile selection ------------------------------------------------
    # Multi-tile blocks are multiples of 128 (legal sublane-dim blocks for x
    # and the (block_b, 1) output); single-tile uses the exact batch size.
    # >= 2 tiles once B >= 256 (v7x megacore + double-buffering), ~4 tiles for
    # large B, capped at 4096 rows per tile (well under VMEM with the 32 MiB
    # scoped limit below, even with 128-lane padding of the 32-wide x tile).
    if block_b is None:
        if B < 256:
            block_b = B                                        # single tile
        else:
            target_tiles = 4 if B > 2048 else 2                # even tile count
            block_b = min(4096, _round_up(pl.cdiv(B, target_tiles), 128))
    else:
        if block_b >= B:
            block_b = B
        else:
            block_b = min(_round_up(block_b, 128), 4096)
            if block_b >= B:
                block_b = B
    num_tiles = pl.cdiv(B, block_b)

    # ---- tiny weight prep (one-time, negligible) -----------------------------
    w1t = w1.T.astype(compute_dtype)                           # (in_size, hidden)
    b1_2d = b1.reshape(1, hidden).astype(jnp.float32)          # (1, hidden)
    w2_2d = w2.reshape(1, hidden).astype(jnp.float32)          # (1, hidden)
    b2_2d = b2.reshape(1, 1).astype(jnp.float32)               # (1, 1) -> SMEM

    out = pl.pallas_call(
        _mlp_kernel,
        out_shape=jax.ShapeDtypeStruct((B, 1), jnp.float32),
        grid_spec=pltpu.PrefetchScalarGridSpec(
            num_scalar_prefetch=0,
            grid=(num_tiles,),
            in_specs=[
                pl.BlockSpec((block_b, in_size), lambda i: (i, 0)),  # x tile (f32)
                pl.BlockSpec((in_size, hidden), lambda i: (0, 0)),   # W1^T resident
                pl.BlockSpec((1, hidden), lambda i: (0, 0)),         # b1
                pl.BlockSpec((1, hidden), lambda i: (0, 0)),         # w2
                pl.BlockSpec(memory_space=pltpu.MemorySpace.SMEM),   # b2 scalar
            ],
            out_specs=pl.BlockSpec((block_b, 1), lambda i: (i, 0)),
        ),
        compiler_params=pltpu.CompilerParams(
            dimension_semantics=("parallel",),
            vmem_limit_bytes=32 * 1024 * 1024,
        ),
    )(x, w1t, b1_2d, w2_2d, b2_2d)

    return out


if __name__ == "__main__":
    INPUT_SIZE, HIDDEN = 32, 64

    key = jax.random.PRNGKey(0)
    k_x, k_w1, k_b1, k_w2, k_b2, k_x2 = jax.random.split(key, 6)

    # Deterministic params (mimic nn.Linear uniform(-1/sqrt(fan_in), 1/sqrt(fan_in))).
    bound1 = 1.0 / jnp.sqrt(jnp.float32(INPUT_SIZE))
    w1 = jax.random.uniform(k_w1, (HIDDEN, INPUT_SIZE), jnp.float32, -bound1, bound1)
    b1 = jax.random.uniform(k_b1, (HIDDEN,), jnp.float32, -bound1, bound1)
    bound2 = 1.0 / jnp.sqrt(jnp.float32(HIDDEN))
    w2 = jax.random.uniform(k_w2, (1, HIDDEN), jnp.float32, -bound2, bound2)
    b2 = jax.random.uniform(k_b2, (1,), jnp.float32, -bound2, bound2)

    def ref_forward(xv):
        return jnp.maximum(xv @ w1.T + b1, 0.0) @ w2.T + b2

    # 1) Small batch, single full tile, f32 compute path, tight tolerance.
    x_small = jax.random.normal(k_x, (8, INPUT_SIZE), dtype=jnp.float32)
    out_f32 = jax.block_until_ready(
        fitness_predictor_forward(x_small, w1, b1, w2, b2,
                                  compute_dtype=jnp.float32))
    assert out_f32.shape == (8, 1)
    assert jnp.allclose(out_f32, ref_forward(x_small), atol=1e-5, rtol=1e-5)

    # 2) Multi-tile grid with a partial last block, default bf16 MXU inputs.
    x_big = jax.random.normal(k_x2, (300, INPUT_SIZE), dtype=jnp.float32)
    out_bf16 = jax.block_until_ready(
        fitness_predictor_forward(x_big, w1, b1, w2, b2))
    assert out_bf16.shape == (300, 1)
    assert jnp.allclose(out_bf16, ref_forward(x_big), atol=5e-2, rtol=5e-2)

    # 3) Explicit block_b path (partial tiles + clamping), f32 for tight check.
    out_blk = jax.block_until_ready(
        fitness_predictor_forward(x_big, w1, b1, w2, b2, block_b=128,
                                  compute_dtype=jnp.float32))
    assert out_blk.shape == (300, 1)
    assert jnp.allclose(out_blk, ref_forward(x_big), atol=1e-5, rtol=1e-5)

    print("KERNEL_OK")
</pallas_src>

<mosaic_0001>
module attributes {stable_mosaic.version = 11 : i64} {
  func.func @_mlp_kernel(%arg0: i32, %arg1: memref<8x32xf32, #tpu.memory_space<vmem>>, %arg2: memref<32x64xf32, #tpu.memory_space<vmem>>, %arg3: memref<1x64xf32, #tpu.memory_space<vmem>>, %arg4: memref<1x64xf32, #tpu.memory_space<vmem>>, %arg5: memref<1x1xf32, #tpu.memory_space<smem>>, %arg6: memref<8x1xf32, #tpu.memory_space<vmem>>) attributes {dimension_semantics = [#tpu.dimension_semantics<parallel>], iteration_bounds = array<i64: 1>, scalar_prefetch = 0 : i64, scratch_operands = 0 : i64, tpu.core_type = #tpu.core_type<tc>, window_params = [{transform_indices = @transform_0, window_bounds = array<i64: 8, 32>}, {pipeline_mode = #tpu.pipeline_mode<synchronous>, transform_indices = @transform_1, window_bounds = array<i64: 32, 64>}, {pipeline_mode = #tpu.pipeline_mode<synchronous>, transform_indices = @transform_2, window_bounds = array<i64: 1, 64>}, {pipeline_mode = #tpu.pipeline_mode<synchronous>, transform_indices = @transform_3, window_bounds = array<i64: 1, 64>}, {transform_indices = @transform_4, window_bounds = array<i64: 1, 1>}, {transform_indices = @transform_5, window_bounds = array<i64: 8, 1>}]} {
    %c0 = arith.constant 0 : index
    %c0_0 = arith.constant 0 : index
    %0 = vector.load %arg1[%c0, %c0_0] : memref<8x32xf32, #tpu.memory_space<vmem>>, vector<8x32xf32>
    %c0_1 = arith.constant 0 : index
    %c0_2 = arith.constant 0 : index
    %1 = vector.load %arg2[%c0_1, %c0_2] : memref<32x64xf32, #tpu.memory_space<vmem>>, vector<32x64xf32>
    %cst = arith.constant dense<0.000000e+00> : vector<8x64xf32>
    %2 = tpu.matmul %0, %1, %cst {dimension_numbers = #tpu.dot_dimension_numbers<[1], [0], [0], [1], [0, 0, 1, 1], [], []>} : vector<8x32xf32>, vector<32x64xf32>, vector<8x64xf32> -> vector<8x64xf32>
    %c0_3 = arith.constant 0 : index
    %c0_4 = arith.constant 0 : index
    %3 = vector.load %arg3[%c0_3, %c0_4] : memref<1x64xf32, #tpu.memory_space<vmem>>, vector<1x64xf32>
    %4 = vector.broadcast %3 : vector<1x64xf32> to vector<8x64xf32>
    %5 = arith.addf %2, %4 : vector<8x64xf32>
    %cst_5 = arith.constant 0.000000e+00 : f32
    %6 = vector.broadcast %cst_5 : f32 to vector<8x64xf32>
    %7 = arith.maximumf %5, %6 : vector<8x64xf32>
    %c0_6 = arith.constant 0 : index
    %c0_7 = arith.constant 0 : index
    %8 = vector.load %arg4[%c0_6, %c0_7] : memref<1x64xf32, #tpu.memory_space<vmem>>, vector<1x64xf32>
    %9 = vector.broadcast %8 : vector<1x64xf32> to vector<8x64xf32>
    %10 = arith.mulf %7, %9 : vector<8x64xf32>
    %cst_8 = arith.constant dense<0.000000e+00> : vector<8xf32>
    %11 = vector.multi_reduction <add>, %10, %cst_8 [1] : vector<8x64xf32> to vector<8xf32>
    %12 = vector.shape_cast %11 : vector<8xf32> to vector<8x1xf32>
    %c0_9 = arith.constant 0 : index
    %c0_10 = arith.constant 0 : index
    %13 = memref.load %arg5[%c0_9, %c0_10] : memref<1x1xf32, #tpu.memory_space<smem>>
    %14 = vector.broadcast %13 : f32 to vector<8x1xf32>
    %15 = arith.addf %12, %14 : vector<8x1xf32>
    %c0_11 = arith.constant 0 : index
    %c0_12 = arith.constant 0 : index
    %16 = vector.load %arg6[%c0_11, %c0_12] : memref<8x1xf32, #tpu.memory_space<vmem>>, vector<8x1xf32>
    tpu.vector_store %arg6[%c0_11, %c0_12], %15 {strides = array<i32>} : memref<8x1xf32, #tpu.memory_space<vmem>>, vector<8x1xf32>,
    return
  }
  func.func @transform_0(%arg0: i32) -> (i32, i32) {
    %c0_i32 = arith.constant 0 : i32
    %c0_i32_0 = arith.constant 0 : i32
    return %arg0, %c0_i32 : i32, i32
  }
  func.func @transform_1(%arg0: i32) -> (i32, i32) {
    %c0_i32 = arith.constant 0 : i32
    %c0_i32_0 = arith.constant 0 : i32
    %c0_i32_1 = arith.constant 0 : i32
    return %c0_i32, %c0_i32_0 : i32, i32
  }
  func.func @transform_2(%arg0: i32) -> (i32, i32) {
    %c0_i32 = arith.constant 0 : i32
    %c0_i32_0 = arith.constant 0 : i32
    %c0_i32_1 = arith.constant 0 : i32
    return %c0_i32, %c0_i32_0 : i32, i32
  }
  func.func @transform_3(%arg0: i32) -> (i32, i32) {
    %c0_i32 = arith.constant 0 : i32
    %c0_i32_0 = arith.constant 0 : i32
    %c0_i32_1 = arith.constant 0 : i32
    return %c0_i32, %c0_i32_0 : i32, i32
  }
  func.func @transform_4(%arg0: i32) -> (i32, i32) {
    %c0_i32 = arith.constant 0 : i32
    %c0_i32_0 = arith.constant 0 : i32
    %c0_i32_1 = arith.constant 0 : i32
    return %c0_i32, %c0_i32_0 : i32, i32
  }
  func.func @transform_5(%arg0: i32) -> (i32, i32) {
    %c0_i32 = arith.constant 0 : i32
    %c0_i32_0 = arith.constant 0 : i32
    return %arg0, %c0_i32 : i32, i32
  }
}

</mosaic_0001>

<bundles_post_ra>
// kernel: tpu_custom_call.1
= control target key start
LH: loop header
LB: loop body
LE: loop exit
PB: predicated region body
PF: predicated region fallthrough
CT: control target
= control target key end

     0   :  { %11 = vsyncpa [#allocation4], 0  ;;  %s216_s0 = inlined_call_operand.hbm [shape: f32[8,32], index: 0, kind: input, shape index: {}]   ;;  %s217_s1 = inlined_call_operand.hbm [shape: f32[32,64], index: 1, kind: input, shape index: {}]   ;;  %s218_s2 = inlined_call_operand.vmem [shape: f32[1,64], index: 2, kind: input, shape index: {}]   ;;  %s219_s3 = inlined_call_operand.vmem [shape: f32[1,64], index: 3, kind: input, shape index: {}]   ;;  %s220_s4 = inlined_call_operand.<no memory space> [shape: f32[1,1], index: 4, kind: input, shape index: {}]   ;;  %s221_s5 = inlined_call_operand.vmem [shape: f32[8,1], index: 5, kind: output, shape index: {}]  }
   0x1   :  { %s18_s20 = sshll.u32 %s216_s0, 4  ;;  %s19_s20 = int_to_ptr.hbm [resolvable:$true] %s18_s20 }
   0x2   :  { %12 = vsyncpa [#allocation6], 0  ;;  %s164_s21 = smov [#allocation3]   ;;  %s28_s25 = sshll.u32 %s217_s1, 4  ;;  %s29_s25 = int_to_ptr.hbm [resolvable:$true] %s28_s25 }
   0x3   :  { %s20_s22 = sshll.u32 %s164_s21, 4  ;;  %s165_s26 = smov [#allocation5]   ;;  %s21_s22 = int_to_ptr.vmem [resolvable:$true] %s20_s22 }
   0x4   :  { %23 = dma.hbm_to_vmem [thread:$0]  %s19_s20, 128, %s21_s22, [#allocation4]  }
   0x5   :  { %s30_s27 = sshll.u32 %s165_s26, 4  ;;  %s166_s28 = smov 128   ;;  %s31_s27 = int_to_ptr.vmem [resolvable:$true] %s30_s27 }
   0x6   :  { %s167_s29 = smov 8  }
   0x7   :  { %36 = dma.hbm_to_vmem [thread:$0]  %s29_s25, 512, %s31_s27, [#allocation6], %s166_s28, %s166_s28, %s167_s29  }
   0x8   :  { %160 = dma.done.wait [#allocation4], 128  }
   0x9   :  { %161 = vsyncadd [#allocation4], 4294967168 }
   0xa   :  { %162 = dma.done.wait [#allocation6], 512  }
   0xb   :  { %163 = vsyncadd [#allocation6], 4294966784  ;;  %v55_v0 = vld [vmem:[#allocation5 + $0x18] sm:$0xff]  ;;  %v54_v1 = vld [vmem:[#allocation5 + $0x10] sm:$0xff]  ;;  %vm60_vm0 = vcmask 261120   ;;  %vm90_vm1 = vcmask 523264   ;;  %v95_v12 = vstv %s220_s4 }
   0xc   :  { %76 = vmatpush.msra.mxu0 %v55_v0  ;;  %v53_v2 = vld [vmem:[#allocation5 + $0x8] sm:$0xff]  ;;  %v52_v3 = vld [vmem:[#allocation5] sm:$0xff]  ;;  %v51_v4 = vld [vmem:[#allocation3] sm:$0xff]  ;;  %vm97_vm2 = vcmask 7168  }
   0xd   :  { %v110_v5 = vld [vmem:[%s218_s2] ss:$0 sm:$0xff] }
   0xe   :  { %77 = vmatpush.msra.mxu0 %v54_v1  ;;  %v111_v8 = vld [vmem:[%s219_s3] ss:$0 sm:$0xff] }
  0x10   :  { %78 = vmatpush.msra.mxu0 %v53_v2 }
  0x12   :  { %79 = vmatpush.msra.mxu0 %v52_v3 }
  0x13   :  { %105 = vmatmul.msk.f32.vlgmr.msra.gmra.mxu0 %vm60_vm0, %v51_v4 }
  0x90   :  { %v81_v6 = vpop.f32.mrf.mxu0 }
  0x91   :  { %v82_v7 = vadd.f32 %v110_v5, %v81_v6 }
  0x93   :  { %v84_v9 = vmax.f32 %v82_v7, 0.0 }
  0x95   :  { %v89_v10 = vmul.f32 %v111_v8, %v84_v9 }
  0x97   :  { %v91_v11 = vsel %vm90_vm1, %v89_v10, 0.0 }
  0x98   :  { %92 = vadd.xlane.f32.xlu0 %v91_v11 }
 0x10b   :  { %v93_v13 = vpop.xlane.xlu0 %92 }
 0x10c   :  { %v96_v14 = vadd.f32 %v95_v12, %v93_v13 }
 0x10e   :  { %98 = vst.msk [vmem:[%s221_s5] sm:$0xff] %vm97_vm2, %v96_v14 }
 0x10f   :  { %103 = vsyncpa [#allocation4], 1 }
 0x110   :  { %104 = vsyncpa [#allocation6], 1 }

</bundles_post_ra>
